<compile_context>
chip_gen: v6e
topology: v6e:2x2x1
jax: 0.10.0
libtpu: 0.0.40
codegen_flags: <defaults>
</compile_context>

<pallas_src>
import jax
import jax.numpy as jnp
from jax.experimental import pallas as pl
from jax.experimental.pallas import tpu as pltpu


def _round_up(n, m):
    return ((n + m - 1) // m) * m


def _linear_kernel(x_ref, w_ref, b_ref, o_ref):
    # x_ref: (TM, F) VMEM    w_ref: (1, F) VMEM (lane-dense)
    # b_ref: (1, 1) SMEM     o_ref: (TM, 1) VMEM
    bias = b_ref[0, 0]
    # VPU broadcast-multiply + XLU lane reduce: the right shape for an N=1 matvec.
    acc = jnp.sum(x_ref[...] * w_ref[...], axis=-1, keepdims=True)   # (TM, 1) f32
    o_ref[...] = (acc + bias).astype(o_ref.dtype)


_VMEM_LIMIT_BYTES = 32 * 1024 * 1024     # safe on v5e / v6e / v7x scoped defaults
_MAX_TILE_BYTES = 8 * 1024 * 1024        # per x tile (x2 for double buffering)


def linear_regression_forward(x, weight, bias, *, block_rows=512):
    """y = x @ weight.T + bias (forward of LinearRegressionWithRegularization)."""
    batch, in_features = x.shape
    dtype = x.dtype

    # Row-tile size: full (8-aligned) batch when small, else `block_rows`, clamped so
    # a double-buffered x tile stays comfortably inside the VMEM budget for any F.
    bytes_per_row = in_features * jnp.dtype(dtype).itemsize
    max_rows = max(8, (_MAX_TILE_BYTES // max(bytes_per_row, 1)) // 8 * 8)
    tm = min(_round_up(batch, 8), block_rows, max_rows)

    padded_batch = _round_up(batch, tm)
    if padded_batch != batch:
        x = jnp.pad(x, ((0, padded_batch - batch), (0, 0)))
    num_tiles = padded_batch // tm

    w_row = weight.reshape(1, in_features)   # lane-dense weight row
    b_2d = bias.reshape(1, 1)                # scalar, lives in SMEM

    y = pl.pallas_call(
        _linear_kernel,
        out_shape=jax.ShapeDtypeStruct((padded_batch, 1), dtype),
        grid=(num_tiles,),
        in_specs=[
            pl.BlockSpec((tm, in_features), lambda i: (i, 0)),
            pl.BlockSpec((1, in_features), lambda i: (0, 0)),
            pl.BlockSpec(memory_space=pltpu.MemorySpace.SMEM),
        ],
        out_specs=pl.BlockSpec((tm, 1), lambda i: (i, 0)),
        compiler_params=pltpu.CompilerParams(
            dimension_semantics=("parallel",),   # batch tiles are independent
            vmem_limit_bytes=_VMEM_LIMIT_BYTES,
        ),
    )(x, w_row, b_2d)

    return y[:batch]


# TODO(synk): regularization_loss() (L1/L2 scalar reduction over the parameters) is a
# training-time quantity, not part of forward(); compute it in plain JAX if needed.


if __name__ == "__main__":
    key = jax.random.PRNGKey(0)
    k_x, k_w, k_b, k_x2 = jax.random.split(key, 4)

    # Small shape implied by the module (single tile, single grid step).
    batch, in_features = 8, 32
    bound = 1.0 / jnp.sqrt(jnp.float32(in_features))
    x = jax.random.normal(k_x, (batch, in_features), dtype=jnp.float32)
    weight = jax.random.uniform(k_w, (1, in_features), jnp.float32, -bound, bound)
    bias = jax.random.uniform(k_b, (1,), jnp.float32, -bound, bound)

    y = jax.block_until_ready(linear_regression_forward(x, weight, bias))
    y_ref = x @ weight.T + bias
    assert y.shape == (batch, 1)
    assert jnp.allclose(y, y_ref, atol=1e-5, rtol=1e-5)

    # Second check: exercises the multi-tile + ragged-batch (padded) path.
    batch2, feat2 = 1152, 96
    x2 = jax.random.normal(k_x2, (batch2, feat2), dtype=jnp.float32)
    w2 = jax.random.uniform(k_w, (1, feat2), jnp.float32, -bound, bound)
    b2 = jax.random.uniform(k_b, (1,), jnp.float32, -bound, bound)
    y2 = jax.block_until_ready(linear_regression_forward(x2, w2, b2))
    y2_ref = x2 @ w2.T + b2
    assert y2.shape == (batch2, 1)
    assert jnp.allclose(y2, y2_ref, atol=1e-4, rtol=1e-4)

    print("KERNEL_OK")
</pallas_src>

<mosaic_0001>
module attributes {stable_mosaic.version = 11 : i64} {
  func.func @_linear_kernel(%arg0: i32, %arg1: memref<8x32xf32, #tpu.memory_space<vmem>>, %arg2: memref<1x32xf32, #tpu.memory_space<vmem>>, %arg3: memref<1x1xf32, #tpu.memory_space<smem>>, %arg4: memref<8x1xf32, #tpu.memory_space<vmem>>) attributes {dimension_semantics = [#tpu.dimension_semantics<parallel>], iteration_bounds = array<i64: 1>, scalar_prefetch = 0 : i64, scratch_operands = 0 : i64, tpu.core_type = #tpu.core_type<tc>, window_params = [{transform_indices = @transform_0, window_bounds = array<i64: 8, 32>}, {pipeline_mode = #tpu.pipeline_mode<synchronous>, transform_indices = @transform_1, window_bounds = array<i64: 1, 32>}, {transform_indices = @transform_2, window_bounds = array<i64: 1, 1>}, {transform_indices = @transform_3, window_bounds = array<i64: 8, 1>}]} {
    %c0 = arith.constant 0 : index
    %c0_0 = arith.constant 0 : index
    %0 = memref.load %arg3[%c0, %c0_0] : memref<1x1xf32, #tpu.memory_space<smem>>
    %c0_1 = arith.constant 0 : index
    %c0_2 = arith.constant 0 : index
    %1 = vector.load %arg1[%c0_1, %c0_2] : memref<8x32xf32, #tpu.memory_space<vmem>>, vector<8x32xf32>
    %c0_3 = arith.constant 0 : index
    %c0_4 = arith.constant 0 : index
    %2 = vector.load %arg2[%c0_3, %c0_4] : memref<1x32xf32, #tpu.memory_space<vmem>>, vector<1x32xf32>
    %3 = vector.broadcast %2 : vector<1x32xf32> to vector<8x32xf32>
    %4 = arith.mulf %1, %3 : vector<8x32xf32>
    %cst = arith.constant dense<0.000000e+00> : vector<8xf32>
    %5 = vector.multi_reduction <add>, %4, %cst [1] : vector<8x32xf32> to vector<8xf32>
    %6 = vector.shape_cast %5 : vector<8xf32> to vector<8x1xf32>
    %7 = vector.broadcast %0 : f32 to vector<8x1xf32>
    %8 = arith.addf %6, %7 : vector<8x1xf32>
    %c0_5 = arith.constant 0 : index
    %c0_6 = arith.constant 0 : index
    %9 = vector.load %arg4[%c0_5, %c0_6] : memref<8x1xf32, #tpu.memory_space<vmem>>, vector<8x1xf32>
    tpu.vector_store %arg4[%c0_5, %c0_6], %8 {strides = array<i32>} : memref<8x1xf32, #tpu.memory_space<vmem>>, vector<8x1xf32>,
    return
  }
  func.func @transform_0(%arg0: i32) -> (i32, i32) {
    %c0_i32 = arith.constant 0 : i32
    %c0_i32_0 = arith.constant 0 : i32
    return %arg0, %c0_i32 : i32, i32
  }
  func.func @transform_1(%arg0: i32) -> (i32, i32) {
    %c0_i32 = arith.constant 0 : i32
    %c0_i32_0 = arith.constant 0 : i32
    %c0_i32_1 = arith.constant 0 : i32
    return %c0_i32, %c0_i32_0 : i32, i32
  }
  func.func @transform_2(%arg0: i32) -> (i32, i32) {
    %c0_i32 = arith.constant 0 : i32
    %c0_i32_0 = arith.constant 0 : i32
    %c0_i32_1 = arith.constant 0 : i32
    return %c0_i32, %c0_i32_0 : i32, i32
  }
  func.func @transform_3(%arg0: i32) -> (i32, i32) {
    %c0_i32 = arith.constant 0 : i32
    %c0_i32_0 = arith.constant 0 : i32
    return %arg0, %c0_i32 : i32, i32
  }
}

</mosaic_0001>

<bundles_post_ra>
// kernel: tpu_custom_call.1
= control target key start
LH: loop header
LB: loop body
LE: loop exit
PB: predicated region body
PF: predicated region fallthrough
CT: control target
= control target key end

     0   :  { %9 = vsyncpa [#allocation4], 0  ;;  %s74_s12 = smov [#allocation3]   ;;  %s107_s0 = inlined_call_operand.hbm [shape: f32[8,32], index: 0, kind: input, shape index: {}]   ;;  %s108_s1 = inlined_call_operand.vmem [shape: f32[1,32], index: 1, kind: input, shape index: {}]   ;;  %s109_s2 = inlined_call_operand.<no memory space> [shape: f32[1,1], index: 2, kind: input, shape index: {}]   ;;  %s110_s3 = inlined_call_operand.vmem [shape: f32[8,1], index: 3, kind: output, shape index: {}]  }
   0x1   :  { %s16_s13 = sshll.u32 %s74_s12, 4  ;;  %s17_s13 = int_to_ptr.vmem [resolvable:$true] %s16_s13 }
   0x2   :  { %s60_s14 = scalar_lea.vmem %s17_s13, 128  ;;  %p65_p1 = scmp.lt.s32.totalorder %s17_s13, %s17_s13 }
   0x3   :  { %p61_p0 = scmp.ne.s32.totalorder %s17_s13, %s60_s14  ;;  %p66_p2 = scmp.lt.s32.totalorder %s60_s14, %s60_s14 }
   0x5   :  { %p67_p3 = por %p66_p2, %p65_p1 }
   0x7   :  { %p68_p4 = pnand %p67_p3, %p61_p0 }
   0x9   :  { %71 = shalt.err (!%p68_p4)
}
   0xa   :  { %19 = dma.hbm_to_vmem [thread:$0]  %s107_s0, 128, %s17_s13, [#allocation4]  }
   0xb   :  { %72 = dma.done.wait [#allocation4], 128  }
   0xc   :  { %73 = vsyncadd [#allocation4], 4294967168  ;;  %v28_v0 = vld [vmem:[#allocation3] sm:$0xff]  ;;  %vm37_vm0 = vcmask 261120   ;;  %v41_v4 = vstv %s109_s2  ;;  %vm43_vm1 = vcmask 7168  }
   0xd   :  { %v50_v1 = vld [vmem:[%s108_s1] ss:$0 sm:$0xff] }
   0xe   :  { %v36_v2 = vmul.f32 %v50_v1, %v28_v0 }
  0x10   :  { %v38_v3 = vsel %vm37_vm0, %v36_v2, 0.0 }
  0x11   :  { %39 = vadd.xlane.f32.xlu0 %v38_v3 }
  0x9a   :  { %v40_v5 = vpop.xlane.xlu0 %39 }
  0x9b   :  { %v42_v6 = vadd.f32 %v41_v4, %v40_v5 }
  0x9d   :  { %44 = vst.msk [vmem:[%s110_s3] sm:$0xff] %vm43_vm1, %v42_v6 }
  0x9e   :  { %49 = vsyncpa [#allocation4], 1 }

</bundles_post_ra>
